<compile_context>
chip_gen: v6e
topology: v6e:2x2x1
jax: 0.10.0
libtpu: 0.0.40
codegen_flags: <defaults>
</compile_context>

<pallas_src>
import functools

import jax
import jax.numpy as jnp
from jax.experimental import pallas as pl
from jax.experimental.pallas import tpu as pltpu

IN_FEATURES = 36
HIDDEN = 36
LANE = 128
SUBLANE = 8


def _cdiv(a, b):
    return -(-a // b)


def _round_up(n, m):
    return ((n + m - 1) // m) * m


def _mlp_kernel(x_ref, w1_ref, b1_ref, w2_ref, b2_ref, o_ref):
    # Fused hot path: (BT,36)@(36,36)+b1 -> ReLU -> (BT,36)@(36,C)+b2 -> tanh.
    x = x_ref[...]                                                     # (BT, 36)
    h = jnp.dot(x, w1_ref[...], preferred_element_type=jnp.float32) + b1_ref[...]
    h = jnp.maximum(h, 0.0)                                            # ReLU (VPU)
    y = jnp.dot(h, w2_ref[...], preferred_element_type=jnp.float32) + b2_ref[...]
    o_ref[...] = jnp.tanh(y)                                           # tanh (EUP)


def prepare_params(w1, b1, w2, b2):
    """One-time weight prep (hoisted out of the per-call hot path):
    transpose PyTorch-style (out, in) weights to (in, out), reshape biases to
    (1, out).  No padding — the kernel writes the real code_len width."""
    w1_t = jnp.asarray(w1, jnp.float32).T                              # (36, 36)
    b1_r = jnp.asarray(b1, jnp.float32)[None, :]                       # (1, 36)
    w2_t = jnp.asarray(w2, jnp.float32).T                              # (36, C)
    b2_r = jnp.asarray(b2, jnp.float32)[None, :]                       # (1, C)
    return (w1_t, b1_r, w2_t, b2_r)


def _choose_batch_tile(batch, batch_tile):
    """Balanced batch tile (multiple of 8 sublanes).  Forces >= 2 grid steps
    when there is enough work so the 'parallel' axis can use both v7x cores."""
    n_tiles = max(1, _cdiv(batch, batch_tile))
    bt = _round_up(_cdiv(batch, n_tiles), SUBLANE)
    if _cdiv(batch, bt) < 2 and batch > SUBLANE:
        bt = _round_up(_cdiv(batch, 2), SUBLANE)
    return max(bt, SUBLANE)


@functools.partial(jax.jit, static_argnames=("batch_tile",))
def linear_forward_prepared(x, params, *, batch_tile=8192):
    """Hot path. x: (B, 36) f32; params from prepare_params()."""
    w1_t, b1_r, w2_t, b2_r = params
    x = jnp.asarray(x, jnp.float32)
    B = x.shape[0]
    code_len = w2_t.shape[1]

    bt = _choose_batch_tile(B, batch_tile)
    grid = (_cdiv(B, bt),)

    # VMEM footprint with lane padding: both the (bt,36) x tile and the
    # (bt,code_len<=128) out tile occupy bt*128 f32 lanes in VMEM, double
    # buffered -> ~4 * bt * 128 * 4 bytes, plus tiny resident weights.
    tile_bytes = bt * LANE * 4
    vmem_limit = int(min(max(4 * tile_bytes + (4 << 20), 16 << 20), 48 << 20))

    flops = 2 * B * (IN_FEATURES * HIDDEN + HIDDEN * code_len)
    bytes_accessed = 4 * (
        B * (IN_FEATURES + code_len)
        + IN_FEATURES * HIDDEN + HIDDEN
        + HIDDEN * code_len + code_len
    )

    out = pl.pallas_call(
        _mlp_kernel,
        out_shape=jax.ShapeDtypeStruct((B, code_len), jnp.float32),
        grid_spec=pltpu.PrefetchScalarGridSpec(
            num_scalar_prefetch=0,
            grid=grid,
            in_specs=[
                # x tiles pipeline over the batch axis (ragged last tile OK:
                # OOB rows are never written back and rows are independent).
                pl.BlockSpec((bt, IN_FEATURES), lambda i: (i, 0)),
                # Weights / biases: same block every step -> VMEM-resident.
                pl.BlockSpec(w1_t.shape, lambda i: (0, 0)),
                pl.BlockSpec(b1_r.shape, lambda i: (0, 0)),
                pl.BlockSpec(w2_t.shape, lambda i: (0, 0)),
                pl.BlockSpec(b2_r.shape, lambda i: (0, 0)),
            ],
            # Last dim == full array dim -> satisfies the (8,128) rule without
            # inflating HBM writeback to 128 lanes.
            out_specs=pl.BlockSpec((bt, code_len), lambda i: (i, 0)),
        ),
        compiler_params=pltpu.CompilerParams(
            dimension_semantics=("parallel",),   # megacore-shardable on v7x
            vmem_limit_bytes=vmem_limit,
        ),
        cost_estimate=pl.CostEstimate(
            flops=flops,
            transcendentals=B * code_len,
            bytes_accessed=bytes_accessed,
        ),
    )(x, w1_t, b1_r, w2_t, b2_r)
    return out


def linear_forward(x, w1, b1, w2, b2, batch_tile=8192):
    """Convenience wrapper: PyTorch-layout weights in, forward out."""
    params = prepare_params(w1, b1, w2, b2)
    return linear_forward_prepared(x, params, batch_tile=batch_tile)


def init_params(key, code_len):
    """Deterministic init mimicking nn.Linear default (uniform +-1/sqrt(fan_in))."""
    k1, k2, k3, k4 = jax.random.split(key, 4)
    bound = 1.0 / jnp.sqrt(36.0)
    w1 = jax.random.uniform(k1, (36, 36), jnp.float32, -bound, bound)
    b1 = jax.random.uniform(k2, (36,), jnp.float32, -bound, bound)
    w2 = jax.random.uniform(k3, (code_len, 36), jnp.float32, -bound, bound)
    b2 = jax.random.uniform(k4, (code_len,), jnp.float32, -bound, bound)
    return w1, b1, w2, b2


if __name__ == "__main__":
    key = jax.random.PRNGKey(0)
    kx1, kx2, kx3, kp = jax.random.split(key, 4)

    code_len = 16
    w1, b1, w2, b2 = init_params(kp, code_len)
    params = prepare_params(w1, b1, w2, b2)

    def reference(x):
        return jnp.tanh(jnp.maximum(x @ w1.T + b1, 0.0) @ w2.T + b2)

    # Single exact tile.
    x_small = jax.random.normal(kx1, (8, 36), jnp.float32)
    out_small = jax.block_until_ready(linear_forward_prepared(x_small, params))
    assert out_small.shape == (8, code_len)
    assert jnp.allclose(out_small, reference(x_small), atol=1e-5, rtol=1e-5)

    # Non-multiple-of-8 batch -> forced 2-step grid (v7x two-core path) with a
    # ragged last tile and no host-side padding.
    x_mid = jax.random.normal(kx2, (37, 36), jnp.float32)
    out_mid = jax.block_until_ready(linear_forward_prepared(x_mid, params))
    assert out_mid.shape == (37, code_len)
    assert jnp.allclose(out_mid, reference(x_mid), atol=1e-5, rtol=1e-5)

    # Larger batch with a small forced tile -> 3 balanced grid steps exercising
    # pipelining and the clipped last output block.
    x_big = jax.random.normal(kx3, (300, 36), jnp.float32)
    out_big = jax.block_until_ready(
        linear_forward_prepared(x_big, params, batch_tile=128))
    assert out_big.shape == (300, code_len)
    assert jnp.allclose(out_big, reference(x_big), atol=1e-5, rtol=1e-5)

    print("KERNEL_OK")
</pallas_src>

<mosaic_0001>
module attributes {stable_mosaic.version = 11 : i64} {
  func.func @_mlp_kernel(%arg0: i32, %arg1: memref<8x36xf32, #tpu.memory_space<vmem>>, %arg2: memref<36x36xf32, #tpu.memory_space<vmem>>, %arg3: memref<1x36xf32, #tpu.memory_space<vmem>>, %arg4: memref<36x16xf32, #tpu.memory_space<vmem>>, %arg5: memref<1x16xf32, #tpu.memory_space<vmem>>, %arg6: memref<8x16xf32, #tpu.memory_space<vmem>>) attributes {dimension_semantics = [#tpu.dimension_semantics<parallel>], iteration_bounds = array<i64: 1>, scalar_prefetch = 0 : i64, scratch_operands = 0 : i64, tpu.core_type = #tpu.core_type<tc>, window_params = [{transform_indices = @transform_0, window_bounds = array<i64: 8, 36>}, {pipeline_mode = #tpu.pipeline_mode<synchronous>, transform_indices = @transform_1, window_bounds = array<i64: 36, 36>}, {pipeline_mode = #tpu.pipeline_mode<synchronous>, transform_indices = @transform_2, window_bounds = array<i64: 1, 36>}, {pipeline_mode = #tpu.pipeline_mode<synchronous>, transform_indices = @transform_3, window_bounds = array<i64: 36, 16>}, {pipeline_mode = #tpu.pipeline_mode<synchronous>, transform_indices = @transform_4, window_bounds = array<i64: 1, 16>}, {transform_indices = @transform_5, window_bounds = array<i64: 8, 16>}]} {
    %c0 = arith.constant 0 : index
    %c0_0 = arith.constant 0 : index
    %0 = vector.load %arg1[%c0, %c0_0] : memref<8x36xf32, #tpu.memory_space<vmem>>, vector<8x36xf32>
    %c0_1 = arith.constant 0 : index
    %c0_2 = arith.constant 0 : index
    %1 = vector.load %arg2[%c0_1, %c0_2] : memref<36x36xf32, #tpu.memory_space<vmem>>, vector<36x36xf32>
    %cst = arith.constant dense<0.000000e+00> : vector<8x36xf32>
    %2 = tpu.matmul %0, %1, %cst {dimension_numbers = #tpu.dot_dimension_numbers<[1], [0], [0], [1], [0, 0, 1, 1], [], []>} : vector<8x36xf32>, vector<36x36xf32>, vector<8x36xf32> -> vector<8x36xf32>
    %c0_3 = arith.constant 0 : index
    %c0_4 = arith.constant 0 : index
    %3 = vector.load %arg3[%c0_3, %c0_4] : memref<1x36xf32, #tpu.memory_space<vmem>>, vector<1x36xf32>
    %4 = vector.broadcast %3 : vector<1x36xf32> to vector<8x36xf32>
    %5 = arith.addf %2, %4 : vector<8x36xf32>
    %cst_5 = arith.constant 0.000000e+00 : f32
    %6 = vector.broadcast %cst_5 : f32 to vector<8x36xf32>
    %7 = arith.maximumf %5, %6 : vector<8x36xf32>
    %c0_6 = arith.constant 0 : index
    %c0_7 = arith.constant 0 : index
    %8 = vector.load %arg4[%c0_6, %c0_7] : memref<36x16xf32, #tpu.memory_space<vmem>>, vector<36x16xf32>
    %cst_8 = arith.constant dense<0.000000e+00> : vector<8x16xf32>
    %9 = tpu.matmul %7, %8, %cst_8 {dimension_numbers = #tpu.dot_dimension_numbers<[1], [0], [0], [1], [0, 0, 1, 1], [], []>} : vector<8x36xf32>, vector<36x16xf32>, vector<8x16xf32> -> vector<8x16xf32>
    %c0_9 = arith.constant 0 : index
    %c0_10 = arith.constant 0 : index
    %10 = vector.load %arg5[%c0_9, %c0_10] : memref<1x16xf32, #tpu.memory_space<vmem>>, vector<1x16xf32>
    %11 = vector.broadcast %10 : vector<1x16xf32> to vector<8x16xf32>
    %12 = arith.addf %9, %11 : vector<8x16xf32>
    %13 = math.tanh %12 : vector<8x16xf32>
    %c0_11 = arith.constant 0 : index
    %c0_12 = arith.constant 0 : index
    %14 = vector.load %arg6[%c0_11, %c0_12] : memref<8x16xf32, #tpu.memory_space<vmem>>, vector<8x16xf32>
    tpu.vector_store %arg6[%c0_11, %c0_12], %13 {strides = array<i32>} : memref<8x16xf32, #tpu.memory_space<vmem>>, vector<8x16xf32>,
    return
  }
  func.func @transform_0(%arg0: i32) -> (i32, i32) {
    %c0_i32 = arith.constant 0 : i32
    %c0_i32_0 = arith.constant 0 : i32
    return %arg0, %c0_i32 : i32, i32
  }
  func.func @transform_1(%arg0: i32) -> (i32, i32) {
    %c0_i32 = arith.constant 0 : i32
    %c0_i32_0 = arith.constant 0 : i32
    %c0_i32_1 = arith.constant 0 : i32
    return %c0_i32, %c0_i32_0 : i32, i32
  }
  func.func @transform_2(%arg0: i32) -> (i32, i32) {
    %c0_i32 = arith.constant 0 : i32
    %c0_i32_0 = arith.constant 0 : i32
    %c0_i32_1 = arith.constant 0 : i32
    return %c0_i32, %c0_i32_0 : i32, i32
  }
  func.func @transform_3(%arg0: i32) -> (i32, i32) {
    %c0_i32 = arith.constant 0 : i32
    %c0_i32_0 = arith.constant 0 : i32
    %c0_i32_1 = arith.constant 0 : i32
    return %c0_i32, %c0_i32_0 : i32, i32
  }
  func.func @transform_4(%arg0: i32) -> (i32, i32) {
    %c0_i32 = arith.constant 0 : i32
    %c0_i32_0 = arith.constant 0 : i32
    %c0_i32_1 = arith.constant 0 : i32
    return %c0_i32, %c0_i32_0 : i32, i32
  }
  func.func @transform_5(%arg0: i32) -> (i32, i32) {
    %c0_i32 = arith.constant 0 : i32
    %c0_i32_0 = arith.constant 0 : i32
    return %arg0, %c0_i32 : i32, i32
  }
}

</mosaic_0001>

<bundles_post_ra>
// kernel: linear_forward_prepared.1
= control target key start
LH: loop header
LB: loop body
LE: loop exit
PB: predicated region body
PF: predicated region fallthrough
CT: control target
= control target key end

     0   :  { %vm38_vm0 = vcmask 1043456   ;;  %v289_v1 = vmov 0.0   ;;  %vm290_vm1 = vmmov 0   ;;  %s368_s0 = inlined_call_operand.vmem [shape: f32[8,36], index: 0, kind: input, shape index: {}]   ;;  %s369_s1 = inlined_call_operand.vmem [shape: f32[36,36], index: 1, kind: input, shape index: {}]   ;;  %s370_s2 = inlined_call_operand.vmem [shape: f32[1,36], index: 2, kind: input, shape index: {}]   ;;  %s371_s3 = inlined_call_operand.vmem [shape: f32[36,16], index: 3, kind: input, shape index: {}]   ;;  %s372_s4 = inlined_call_operand.vmem [shape: f32[1,16], index: 4, kind: input, shape index: {}]   ;;  %s373_s5 = inlined_call_operand.hbm [shape: f32[8,16], index: 5, kind: output, shape index: {}]  }
   0x1   :  { %v26_v0 = vld [vmem:[%s369_s1 + $0x20] sm:$0xf]  ;;  %236 = vmatprep.subr.mxu0 %v289_v1  ;;  %v25_v2 = vld [vmem:[%s369_s1 + $0x18] sm:$0xff]  ;;  %249 = vmatprep.subr.mxu1 %v289_v1  ;;  %v24_v5 = vld [vmem:[%s369_s1 + $0x10] sm:$0xff] }
   0x2   :  { %237 = vmatpush3.msk.msra.mxu0 %vm38_vm0, %v26_v0  ;;  %246 = vmatprep.mubr.msk.f32.mxu0 %vm290_vm1, %v289_v1  ;;  %v117_v3 = vld [vmem:[%s371_s3 + $0x20] sm:$0xf]  ;;  %v116_v4 = vld [vmem:[%s371_s3 + $0x18] sm:$0xff] }
   0x3   :  { %238 = vmatprep.subr.mxu0 %v289_v1  ;;  %250 = vmatpush3.msk.msra.mxu1 %vm38_vm0, %v117_v3 }
   0x4   :  { %10 = vsyncpa [#allocation3], 0  ;;  %239 = vmatpush3.msra.mxu0 %v25_v2  ;;  %251 = vmatprep.subr.mxu1 %v289_v1  ;;  %v23_v6 = vld [vmem:[%s369_s1 + $0x8] sm:$0xff]  ;;  %v22_v7 = vld [vmem:[%s369_s1] sm:$0xff]  ;;  %vm34_vm2 = vcmask 293888   ;;  %vm202_vm3 = vcmask 130048  }
   0x5   :  { %240 = vmatprep.subr.mxu0 %v289_v1  ;;  %252 = vmatpush3.msra.mxu1 %v116_v4  ;;  %v21_v8 = vld [vmem:[%s368_s0] sm:$0xff]  ;;  %v115_v9 = vld [vmem:[%s371_s3 + $0x10] sm:$0xff]  ;;  %v114_v10 = vld [vmem:[%s371_s3 + $0x8] sm:$0xff] }
   0x6   :  { %241 = vmatpush3.msra.mxu0 %v24_v5  ;;  %253 = vmatprep.subr.mxu1 %v289_v1  ;;  %v113_v11 = vld [vmem:[%s371_s3] sm:$0xff]  ;;  %s291_s3 = smov [#allocation2]  }
   0x7   :  { %242 = vmatprep.subr.mxu0 %v289_v1  ;;  %259 = vmatprep.mubr.msk.f32.mxu1 %vm290_vm1, %v289_v1  ;;  %v218_v12 = vld [vmem:[%s370_s2] ss:$0 sm:$0xff]  ;;  %s210_s17 = sshll.u32 %s291_s3, 4  ;;  %s211_s17 = int_to_ptr.vmem [resolvable:$true] %s210_s17 }
   0x8   :  { %243 = vmatpush3.msra.mxu0 %v23_v6  ;;  %254 = vmatpush3.msra.mxu1 %v115_v9  ;;  %v221_v17 = vld [vmem:[%s372_s4] ss:$0 sm:$0xff]  ;;  %s267_s2 = scalar_lea.vmem %s211_s17, 128  ;;  %p272_p1 = scmp.lt.s32.totalorder %s211_s17, %s211_s17 }
   0x9   :  { %244 = vmatprep.subr.mxu0 %v289_v1  ;;  %255 = vmatprep.subr.mxu1 %v289_v1  ;;  %p268_p0 = scmp.ne.s32.totalorder %s211_s17, %s267_s2  ;;  %p273_p2 = scmp.lt.s32.totalorder %s267_s2, %s267_s2 }
   0xa   :  { %245 = vmatpush3.msra.mxu0 %v22_v7  ;;  %256 = vmatpush3.msra.mxu1 %v114_v10 }
   0xb   :  { %247 = vmatmul.mubr.msk.f32.vlgmr.msra.gmra.mxu0 %vm34_vm2, %v21_v8  ;;  %257 = vmatprep.subr.mxu1 %v289_v1  ;;  %p274_p3 = por %p273_p2, %p272_p1 }
   0xc   :  { %258 = vmatpush3.msra.mxu1 %v113_v11 }
   0xd   :  { %p275_p4 = pnand %p274_p3, %p268_p0 }
  0xcb   :  { %v108_v13 = vpop.f32.mrf.mxu0 }
  0xcc   :  { %v109_v14 = vadd.f32 %v218_v12, %v108_v13 }
  0xcd   :  { %v248_v15 = vpop.f32.mrf.mxu0 }
  0xce   :  { %v112_v16 = vmax.f32 %v109_v14, 0.0 }
  0xd0   :  { %260 = vmatmul.mubr.msk.f32.vlgmr.msra.gmra.mxu1 %vm34_vm2, %v112_v16 }
 0x190   :  { %v197_v18 = vpop.f32.mrf.mxu1 }
 0x191   :  { %v198_v19 = vadd.f32 %v221_v17, %v197_v18 }
 0x192   :  { %v261_v20 = vpop.f32.mrf.mxu1 }
 0x193   :  { %265 = vtanh.f32 %v198_v19 }
 0x1a0   :  { %v266_v21 = vpop.eup %265 }
 0x1a1   :  { %203 = vst.msk [vmem:[#allocation2] sm:$0xff] %vm202_vm3, %v266_v21 }
 0x1a2   :  { %278 = shalt.err (!%p275_p4)
}
 0x1a3   :  { %213 = dma.vmem_to_hbm [thread:$0]  %s211_s17, 128, %s373_s5, [#allocation3]  }
 0x1a4   :  { %287 = dma.done.wait [#allocation3], 128  }
 0x1a5   :  { %288 = vsyncadd [#allocation3], 4294967168 }
 0x1a6   :  { %217 = vsyncpa [#allocation3], 1 }

</bundles_post_ra>
